<compile_context>
chip_gen: v5e
topology: v5e:2x2
jax: 0.10.0
libtpu: 0.0.40
codegen_flags: <defaults>
</compile_context>

<pallas_src>
import functools

import jax
import jax.numpy as jnp
from jax.experimental import pallas as pl
from jax.experimental.pallas import tpu as pltpu

_VMEM_LIMIT = 32 * 1024 * 1024


def _round_up(x, m):
    return (x + m - 1) // m * m


def _is_pow2(x):
    return x > 0 and (x & (x - 1)) == 0


# ----------------------------------------------------------------------------
# Kernel 1: projection  h = X_aug @ W_aug  (ones bias column folded in)
# ----------------------------------------------------------------------------
def _proj_kernel(x_ref, w_ref, h_ref):
    h_ref[...] = jnp.dot(
        x_ref[...], w_ref[...], preferred_element_type=jnp.float32
    ).astype(h_ref.dtype)


# ----------------------------------------------------------------------------
# Kernel 2: block-sparse masked softmax attention + att @ h (online softmax).
#   grid = (query blocks, key blocks); key axis is the reduction axis.
#   count_ref/kmap_ref are scalar-prefetched (SMEM); kmap is consumed by the
#   index_maps (compacted nonzero key-block list, last index repeated -> no DMA
#   for skipped steps), count gates the compute body.
# ----------------------------------------------------------------------------
def _gat_attention_kernel(count_ref, kmap_ref, f1_ref, f2t_ref, hk_ref, adj_ref,
                          out_ref, m_sc, *maybe_l, alpha, fold_l, l_col):
    del kmap_ref  # used only by the index maps
    i = pl.program_id(0)
    k = pl.program_id(1)
    l_sc = maybe_l[0] if maybe_l else None

    @pl.when(k == 0)
    def _init():
        m_sc[...] = jnp.full(m_sc.shape, -jnp.inf, jnp.float32)
        out_ref[...] = jnp.zeros(out_ref.shape, out_ref.dtype)
        if not fold_l:
            l_sc[...] = jnp.zeros(l_sc.shape, jnp.float32)

    @pl.when(k < count_ref[i])
    def _compute():
        # e[i,j] = leaky_relu(f1[i] + f2[j]); mask non-edges with -9e15.
        e = f1_ref[...] + f2t_ref[...]                  # (tq,1)+(1,tk) -> (tq,tk)
        e = jnp.maximum(e, alpha * e)                   # leaky_relu, 0<alpha<1
        e = jnp.where(adj_ref[...], e, -9.0e15)         # bool mask, no int cast

        # Online-softmax update (statistics in f32), accumulate into out_ref.
        m_prev = m_sc[...]
        m_new = jnp.maximum(m_prev, jnp.max(e, axis=1, keepdims=True))
        corr = jnp.exp(m_prev - m_new)
        p = jnp.exp(e - m_new)
        if not fold_l:
            l_sc[...] = corr * l_sc[...] + jnp.sum(p, axis=1, keepdims=True)
        out_ref[...] = corr * out_ref[...] + jnp.dot(
            p.astype(hk_ref.dtype), hk_ref[...], preferred_element_type=jnp.float32)
        m_sc[...] = m_new

    # Normalize + relu once per query-row block, after the last key block.
    @pl.when(k == pl.num_programs(1) - 1)
    def _finalize():
        acc = out_ref[...]
        # Denominator: either the folded ones-column accumulator or the scratch sum.
        l = acc[:, l_col:l_col + 1] if fold_l else l_sc[...]
        l = jnp.maximum(l, 1e-30)                       # guard rows with no edges
        inv_l = pl.reciprocal(l, approx=True)           # EUP slot (otherwise idle)
        inv_l = inv_l * (2.0 - l * inv_l)               # 1 Newton step -> ~f32 exact
        out_ref[...] = jnp.maximum(acc * inv_l, 0.0)


# ----------------------------------------------------------------------------
# Wrapper helpers (pure functions of adj / N — cacheable across layers & steps)
# ----------------------------------------------------------------------------
def _choose_tiles(N, tq, tk):
    """Clamp requested power-of-two tiles so small graphs don't over-pad and the
    query axis keeps >= 2 blocks (megacore)."""
    assert _is_pow2(tq) and tq >= 32, "tq must be a power of two >= 32"
    assert _is_pow2(tk) and tk >= 128, "tk must be a power of two >= 128"
    n128 = _round_up(N, 128)
    while tk > 128 and tk > n128:
        tk //= 2
    while tq > 64 and tq > n128 // 2:
        tq //= 2
    n_pad = _round_up(N, max(tq, tk))
    return tq, tk, n_pad


def _block_sparse_schedule(adj_b, nq, tq, nk, tk):
    """count[i] = #nonzero key blocks for query block i; kmap[i,k] = k-th nonzero
    key-block index (last valid index repeated past count[i], so skipped grid
    steps revisit the same block and issue no DMA)."""
    tile_nz = adj_b.reshape(nq, tq, nk, tk).any(axis=(1, 3))          # (nq, nk)
    count = tile_nz.sum(axis=1).astype(jnp.int32)                      # (nq,)
    keys = jnp.where(tile_nz, 0, nk) + jnp.arange(nk, dtype=jnp.int32)[None, :]
    order = jnp.argsort(keys, axis=1).astype(jnp.int32)                # nonzero first
    last = jnp.take_along_axis(order, jnp.maximum(count - 1, 0)[:, None], axis=1)
    kmap = jnp.where(jnp.arange(nk, dtype=jnp.int32)[None, :] < count[:, None],
                     order, last).astype(jnp.int32)
    return count, kmap


def graph_attention_layer(X, adj, W, a, *, alpha=0.2, tq=512, tk=512,
                          h_dtype=jnp.float32):
    """GAT forward (eval mode). X:(N,in)  adj:(N,N)  W:(in,F)  a:(2F,1) -> (N,F).

    h_dtype=jnp.bfloat16 halves the h HBM stream in the attention kernel (attention
    logits f1/f2 stay f32); expect ~1e-3..1e-2 absolute output error.
    NOTE: adjacency preprocessing (adj_b/count/kmap) and parameter packing (W_aug, c)
    are pure functions of adj / W / a — hoist and cache them when reused across
    layers or training steps.
    """
    X = jnp.asarray(X, jnp.float32)
    W = jnp.asarray(W, jnp.float32)
    a = jnp.asarray(a, jnp.float32)
    N, in_f = X.shape
    F = W.shape[1]
    assert adj.shape == (N, N)
    assert a.shape == (2 * F, 1)

    tq, tk, N_pad = _choose_tiles(N, tq, tk)
    nq, nk = N_pad // tq, N_pad // tk
    F_pad = _round_up(F, 128)
    fold_l = F_pad > F            # spare padded column -> softmax denom rides the MXU

    # ---- graph preprocessing (cacheable) ----
    adj_b = jnp.zeros((N_pad, N_pad), jnp.bool_).at[:N, :N].set(adj > 0)
    count, kmap = _block_sparse_schedule(adj_b, nq, tq, nk, tk)

    # ---- parameter / input packing (cacheable) ----
    X_pad = jnp.zeros((N_pad, in_f), jnp.float32).at[:N, :].set(X)
    # Bias column of ones: with W_aug[in_f, F] = 1 we get h[:, F] == 1 for every row,
    # so the softmax denominator accumulates in output column F via p @ h for free.
    X_aug = jnp.concatenate([X_pad, jnp.ones((N_pad, 1), jnp.float32)], axis=1)
    W_aug = jnp.zeros((in_f + 1, F_pad), jnp.float32).at[:in_f, :F].set(W)
    if fold_l:
        W_aug = W_aug.at[in_f, F].set(1.0)

    # Attention-logit projections as a tiny separate f32 matmul: exact even when h is
    # bf16, and no F_pad blow-up just to carry two extra columns.
    c = W @ jnp.concatenate([a[:F], a[F:]], axis=1)            # (in_f, 2)
    f12 = X_pad @ c                                            # (N_pad, 2), f32
    f1 = f12[:, 0:1]                                           # (N_pad, 1)
    f2t = f12[:, 1].reshape(1, N_pad)                          # (1, N_pad), lane-major

    # ---- kernel 1: projection (h computed once; reused across the key sweep) ----
    h_aug = pl.pallas_call(
        _proj_kernel,
        out_shape=jax.ShapeDtypeStruct((N_pad, F_pad), h_dtype),
        grid=(nq,),
        in_specs=[
            pl.BlockSpec((tq, in_f + 1), lambda i: (i, 0)),
            pl.BlockSpec((in_f + 1, F_pad), lambda i: (0, 0)),
        ],
        out_specs=pl.BlockSpec((tq, F_pad), lambda i: (i, 0)),
        compiler_params=pltpu.CompilerParams(
            dimension_semantics=("parallel",),
            vmem_limit_bytes=_VMEM_LIMIT),
    )(X_aug, W_aug)

    # ---- kernel 2: block-sparse masked softmax + att @ h ----
    kernel = functools.partial(_gat_attention_kernel, alpha=alpha,
                               fold_l=fold_l, l_col=F)
    scratch = [pltpu.VMEM((tq, 1), jnp.float32)]               # running max
    if not fold_l:
        scratch.append(pltpu.VMEM((tq, 1), jnp.float32))       # running denominator

    out_pad = pl.pallas_call(
        kernel,
        out_shape=jax.ShapeDtypeStruct((N_pad, F_pad), jnp.float32),
        grid_spec=pltpu.PrefetchScalarGridSpec(
            num_scalar_prefetch=2,
            grid=(nq, nk),
            in_specs=[
                pl.BlockSpec((tq, 1), lambda i, k, cnt, km: (i, 0)),        # f1
                pl.BlockSpec((1, tk), lambda i, k, cnt, km: (0, km[i, k])), # f2^T
                pl.BlockSpec((tk, F_pad), lambda i, k, cnt, km: (km[i, k], 0)),  # h
                pl.BlockSpec((tq, tk), lambda i, k, cnt, km: (i, km[i, k])),     # adj
            ],
            out_specs=pl.BlockSpec((tq, F_pad), lambda i, k, cnt, km: (i, 0)),
            scratch_shapes=scratch),
        compiler_params=pltpu.CompilerParams(
            dimension_semantics=("parallel", "arbitrary"),
            vmem_limit_bytes=_VMEM_LIMIT),
    )(count, kmap, f1, f2t, h_aug, adj_b)

    return out_pad[:N, :F]


# ----------------------------------------------------------------------------
# Pure-JAX reference (mirrors the PyTorch forward in eval mode) and demo
# ----------------------------------------------------------------------------
def xavier_uniform(key, shape):
    fan_in, fan_out = shape
    bound = (6.0 / (fan_in + fan_out)) ** 0.5
    return jax.random.uniform(key, shape, jnp.float32, minval=-bound, maxval=bound)


def reference_gat(X, adj, W, a, alpha=0.2):
    h = X @ W
    F = h.shape[1]
    e = h @ a[:F, :] + (h @ a[F:, :]).T
    e = jnp.where(e > 0, e, alpha * e)
    att = jnp.where(adj > 0, e, -9.0e15)
    att = jax.nn.softmax(att, axis=1)
    return jax.nn.relu(att @ h)


if __name__ == "__main__":
    key = jax.random.PRNGKey(0)
    k_x, k_adj1, k_adj2, k_w, k_a, k_w2, k_a2 = jax.random.split(key, 7)

    N, in_features, out_features, alpha = 200, 16, 32, 0.2

    X = jax.random.normal(k_x, (N, in_features), jnp.float32)
    W = xavier_uniform(k_w, (in_features, out_features))
    a = xavier_uniform(k_a, (2 * out_features, 1))

    # Test 1: banded sparse adjacency (exercises block-sparse tile skipping), f32 h.
    idx = jnp.arange(N)
    band = (jnp.abs(idx[:, None] - idx[None, :]) <= 12).astype(jnp.float32)
    rnd = (jax.random.uniform(k_adj1, (N, N)) > 0.5).astype(jnp.float32)
    adj_sparse = jnp.minimum(band * rnd + jnp.eye(N, dtype=jnp.float32), 1.0)
    out1 = jax.block_until_ready(
        graph_attention_layer(X, adj_sparse, W, a, alpha=alpha, tq=64, tk=128))
    ref1 = reference_gat(X, adj_sparse, W, a, alpha=alpha)
    assert out1.shape == (N, out_features)
    err1 = float(jnp.max(jnp.abs(out1 - ref1)))
    assert jnp.allclose(out1, ref1, atol=1e-4, rtol=1e-4), (
        f"sparse/f32 mismatch vs reference (max abs err {err1:.3e})")

    # Test 2: denser random adjacency, auto-selected tiles, bf16 h stream.
    adj_raw = (jax.random.uniform(k_adj2, (N, N)) > 0.9).astype(jnp.float32)
    adj_dense = jnp.minimum(
        jnp.maximum(adj_raw, adj_raw.T) + jnp.eye(N, dtype=jnp.float32), 1.0)
    out2 = jax.block_until_ready(
        graph_attention_layer(X, adj_dense, W, a, alpha=alpha,
                              h_dtype=jnp.bfloat16))
    ref2 = reference_gat(X, adj_dense, W, a, alpha=alpha)
    err2 = float(jnp.max(jnp.abs(out2 - ref2)))
    assert jnp.allclose(out2, ref2, atol=2e-2, rtol=2e-2), (
        f"bf16 mismatch vs reference (max abs err {err2:.3e})")

    # Test 3: F = 128 (lane-exact features -> explicit-denominator path, no spare col).
    W2 = xavier_uniform(k_w2, (in_features, 128))
    a2 = xavier_uniform(k_a2, (2 * 128, 1))
    out3 = jax.block_until_ready(
        graph_attention_layer(X, adj_sparse, W2, a2, alpha=alpha))
    ref3 = reference_gat(X, adj_sparse, W2, a2, alpha=alpha)
    err3 = float(jnp.max(jnp.abs(out3 - ref3)))
    assert jnp.allclose(out3, ref3, atol=1e-4, rtol=1e-4), (
        f"F=128/f32 mismatch vs reference (max abs err {err3:.3e})")

    print("KERNEL_OK")
</pallas_src>

<mosaic_0001>
module attributes {stable_mosaic.version = 11 : i64} {
  func.func @_proj_kernel(%arg0: i32, %arg1: memref<64x17xf32, #tpu.memory_space<vmem>>, %arg2: memref<17x128xf32, #tpu.memory_space<vmem>>, %arg3: memref<64x128xf32, #tpu.memory_space<vmem>>) attributes {dimension_semantics = [#tpu.dimension_semantics<parallel>], iteration_bounds = array<i64: 4>, scalar_prefetch = 0 : i64, scratch_operands = 0 : i64, tpu.core_type = #tpu.core_type<tc>, window_params = [{transform_indices = @transform_0, window_bounds = array<i64: 64, 17>}, {pipeline_mode = #tpu.pipeline_mode<synchronous>, transform_indices = @transform_1, window_bounds = array<i64: 17, 128>}, {transform_indices = @transform_2, window_bounds = array<i64: 64, 128>}]} {
    %c0 = arith.constant 0 : index
    %c0_0 = arith.constant 0 : index
    %0 = vector.load %arg1[%c0, %c0_0] : memref<64x17xf32, #tpu.memory_space<vmem>>, vector<64x17xf32>
    %c0_1 = arith.constant 0 : index
    %c0_2 = arith.constant 0 : index
    %1 = vector.load %arg2[%c0_1, %c0_2] : memref<17x128xf32, #tpu.memory_space<vmem>>, vector<17x128xf32>
    %cst = arith.constant dense<0.000000e+00> : vector<64x128xf32>
    %2 = tpu.matmul %0, %1, %cst {dimension_numbers = #tpu.dot_dimension_numbers<[1], [0], [0], [1], [0, 0, 1, 1], [], []>} : vector<64x17xf32>, vector<17x128xf32>, vector<64x128xf32> -> vector<64x128xf32>
    %c0_3 = arith.constant 0 : index
    %c0_4 = arith.constant 0 : index
    %3 = vector.load %arg3[%c0_3, %c0_4] : memref<64x128xf32, #tpu.memory_space<vmem>>, vector<64x128xf32>
    tpu.vector_store %arg3[%c0_3, %c0_4], %2 {strides = array<i32>} : memref<64x128xf32, #tpu.memory_space<vmem>>, vector<64x128xf32>,
    return
  }
  func.func @transform_0(%arg0: i32) -> (i32, i32) {
    %c0_i32 = arith.constant 0 : i32
    %c0_i32_0 = arith.constant 0 : i32
    return %arg0, %c0_i32 : i32, i32
  }
  func.func @transform_1(%arg0: i32) -> (i32, i32) {
    %c0_i32 = arith.constant 0 : i32
    %c0_i32_0 = arith.constant 0 : i32
    %c0_i32_1 = arith.constant 0 : i32
    return %c0_i32, %c0_i32_0 : i32, i32
  }
  func.func @transform_2(%arg0: i32) -> (i32, i32) {
    %c0_i32 = arith.constant 0 : i32
    %c0_i32_0 = arith.constant 0 : i32
    return %arg0, %c0_i32 : i32, i32
  }
}

</mosaic_0001>

<bundles_post_ra>
// kernel: tpu_custom_call.1
= control target key start
LH: loop header
LB: loop body
LE: loop exit
PB: predicated region body
PF: predicated region fallthrough
CT: control target
= control target key end

     0   :  { %7 = vsyncpa [#allocation3], 0  ;;  %s566_s0 = inlined_call_operand.vmem [shape: f32[256,17], index: 0, kind: input, shape index: {}]   ;;  %s567_s1 = inlined_call_operand.vmem [shape: f32[17,128], index: 1, kind: input, shape index: {}]   ;;  %s568_s2 = inlined_call_operand.hbm [shape: f32[256,128], index: 2, kind: output, shape index: {}]  }
   0x1   :  { %9 = vsyncpa [#allocation3 + $0x1], 0  ;;  %s465_s9 = smov 0   ;;  %s467_s10 = smov 0  }
   0x2   :  { %s469_s11 = smov 0   ;;  %s471_s12 = smov 0  }
   0x3 LB: > { %s486_s13 = sadd.s32 4294967295, %s446_s12   ;;  %s312_s14 = sadd.s32 4294967294, %s446_s12   ;;  %s446_s12 = sphi %s471_s12, %s574_s12   ;;  %s442_s11 = sphi %s469_s11, %s573_s11   ;;  %s438_s10 = sphi %s467_s10, %s572_s10   ;;  %s434_s9 = sphi %s465_s9, %s571_s9  }
   0x4   : > { %s490_s15 = sadd.s32 1, %s446_s12   ;;  %s69_s16 = sadd.s32 1, %s442_s11 }
   0x5   : > { %s66_s17 = ssub.s32 %s446_s12, %s490_s15  ;;  %p79_p0 = scmp.ne.s32.totalorder %s442_s11, %s438_s10 }
   0x6   : > { %p67_p1 = scmp.eq.s32.totalorder %s66_s17, 0  ;;  %p80_p2 = scmp.eq.s32.totalorder %s486_s13, 3 }
   0x7   : > { %p85_p3 = scmp.ne.s32.totalorder %s438_s10, %s434_s9  ;;  %p86_p4 = scmp.eq.s32.totalorder %s312_s14, 3 }
   0x8   : > { %s501_s18 = scalar_select %p67_p1, %s442_s11, %s69_s16  }
   0x9   : > { %p503_p5 = por %p80_p2, %p79_p0  ;;  %p507_p6 = por %p86_p4, %p85_p3 }
   0xa   : > { %p315_p7 = scmp.ge.s32.totalorder %s446_s12, 1  ;;  %p116_p8 = scmp.lt.s32.totalorder %s446_s12, 5 }
   0xc   : > { %p117_p9 = pnand %p315_p7, %p116_p8 }
   0xd   : > { %s317_s25 = sshll.u32 (!%p117_p9), %s486_s13, 3  ;;  %s135_s4 = sand.u32 (!%p117_p9), 1, %s438_s10  }
   0xe   : > { %120 = sbr.rel (%p117_p9) target bundleno = 171 (0xab), region = 28  ;;  %p139_p10 = scmp.lt.s32.totalorder (!%p117_p9), %s317_s25, 31 }
   0xf   : > { %s316_s5 = sshll.u32 (!%p117_p9), %s135_s4, 6  ;;  %s333_s7 = sshll.u32 (!%p117_p9), %s486_s13, 6 }
  0x10   : > { %s137_s6 = scalar_lea.vmem (!%p117_p9), [#allocation2], %s316_s5  ;;  %s246_s16 = scalar_lea.hbm (!%p117_p9), %s568_s2, %s333_s7 }
  0x11   : > { %s247_s17 = sshll.u32 (!%p117_p9), %s137_s6, 4  ;;  %s249_s21 = sshll.u32 (!%p117_p9), %s246_s16, 4  ;;  %s248_s17 = int_to_ptr.vmem [resolvable:$true] %s247_s17  ;;  %s250_s21 = int_to_ptr.hbm [resolvable:$true] %s249_s21 }
  0x12   : > { %s235_s13 = scalar_lea.sflag (!%p117_p9), [#allocation3], %s135_s4  ;;  %s398_s22 = sshra.s32 (!%p117_p9), %s250_s21, 4  ;;  %s399_s22 = int_to_ptr.hbm [resolvable:$true] %s398_s22 }
  0x13   : > { %v155_v0 = vld [vmem:[%s567_s1 + $0x10] sm:$0x1]  ;;  %vm181_vm0 = vcmask 1040384   ;;  %v154_v1 = vld [vmem:[%s567_s1 + $0x8] sm:$0xff]  ;;  %v153_v2 = vld [vmem:[%s567_s1] sm:$0xff]  ;;  %s576_s25 = smov (!%p139_p10, %s317_s25), 31  ;;  %p405_p0 = scmp.lt.s32.totalorder %s399_s22, %s568_s2 }
  0x14   : > { %335 = vmatpush.msk.msra.mxu2 %vm181_vm0, %v155_v0  ;;  %336 = vmatpush.msk.msra.mxu3 %vm181_vm0, %v155_v0  ;;  %s318_s28 = sshll.u32 %s576_s25, 3  ;;  %vm156_vm1 = vcmask 138240   ;;  %s400_s23 = scalar_lea.hbm %s399_s22, 64 }
  0x15   : > { %319 = vmatpush.msk.msra.mxu0 %vm181_vm0, %v155_v0  ;;  %334 = vmatpush.msk.msra.mxu1 %vm181_vm0, %v155_v0  ;;  %s142_s3 = scalar_lea.vmem %s566_s0, %s318_s28  ;;  %p401_p11 = scmp.ne.s32.totalorder %s399_s22, %s400_s23 }
  0x16   : > { %338 = vmatpush.msra.mxu2 %v154_v1  ;;  %339 = vmatpush.msra.mxu3 %v154_v1  ;;  %v149_v3 = vld [vmem:[%s142_s3 + $0x20] sm:$0xff]  ;;  %v151_v4 = vld [vmem:[%s142_s3 + $0x30] sm:$0xff]  ;;  %v150_v7 = vld [vmem:[%s142_s3 + $0x28] sm:$0xff]  ;;  %s404_s26 = scalar_lea.hbm %s568_s2, 256 }
  0x17   : > { %199 = vmatpush.msra.mxu0 %v154_v1  ;;  %337 = vmatpush.msra.mxu1 %v154_v1  ;;  %v145_v5 = vld [vmem:[%s142_s3] sm:$0xff]  ;;  %v147_v6 = vld [vmem:[%s142_s3 + $0x10] sm:$0xff]  ;;  %v152_v8 = vld [vmem:[%s142_s3 + $0x38] sm:$0xff]  ;;  %p402_p12 = pnand %p401_p11, %p503_p5  ;;  %p406_p1 = scmp.lt.s32.totalorder %s404_s26, %s400_s23 }
  0x18   : > { %341 = vmatpush.msra.mxu2 %v153_v2  ;;  %342 = vmatpush.msra.mxu3 %v153_v2  ;;  %v146_v9 = vld [vmem:[%s142_s3 + $0x8] sm:$0xff]  ;;  %v148_v10 = vld [vmem:[%s142_s3 + $0x18] sm:$0xff] }
  0x19   : > { %200 = vmatpush.msra.mxu0 %v153_v2  ;;  %340 = vmatpush.msra.mxu1 %v153_v2  ;;  %p403_p13 = pneg %p402_p12  ;;  %p407_p2 = por %p406_p1, %p405_p0 }
  0x1a   : > { %324 = vmatmul.msk.f32.vlgmr.msra.gmra.mxu2 %vm156_vm1, %v149_v3  ;;  %326 = vmatmul.msk.f32.vlgmr.msra.gmra.mxu3 %vm156_vm1, %v151_v4 }
  0x1b   : > { %320 = vmatmul.msk.f32.vlgmr.msra.gmra.mxu0 %vm156_vm1, %v145_v5  ;;  %322 = vmatmul.msk.f32.vlgmr.msra.gmra.mxu1 %vm156_vm1, %v147_v6  ;;  %p408_p3 = pnand %p407_p2, %p403_p13 }
  0x22   : > { %325 = vmatmul.msk.f32.gmra.mxu2 %vm156_vm1, %v150_v7  ;;  %327 = vmatmul.msk.f32.gmra.mxu3 %vm156_vm1, %v152_v8 }
  0x23   : > { %321 = vmatmul.msk.f32.gmra.mxu0 %vm156_vm1, %v146_v9  ;;  %323 = vmatmul.msk.f32.gmra.mxu1 %vm156_vm1, %v148_v10 }
  0x98   : > { %v202_v11 = vpop.f32.mrf.mxu0  ;;  %v208_v12 = vpop.f32.mrf.mxu1 }
  0x99   : > { %226 = vst [vmem:[%s137_s6] sm:$0xff] %v202_v11 }
  0x9a   : > { %228 = vst [vmem:[%s137_s6 + $0x10] sm:$0xff] %v208_v12 }
  0x9d   : > { %v214_v13 = vpop.f32.mrf.mxu2  ;;  %v220_v14 = vpop.f32.mrf.mxu3 }
  0x9e   : > { %230 = vst [vmem:[%s137_s6 + $0x20] sm:$0xff] %v214_v13 }
  0x9f   : > { %232 = vst [vmem:[%s137_s6 + $0x30] sm:$0xff] %v220_v14 }
  0xa0   : > { %v205_v15 = vpop.f32.mrf.mxu0  ;;  %v211_v16 = vpop.f32.mrf.mxu1 }
  0xa1   : > { %227 = vst [vmem:[%s137_s6 + $0x8] sm:$0xff] %v205_v15 }
  0xa2   : > { %229 = vst [vmem:[%s137_s6 + $0x18] sm:$0xff] %v211_v16 }
  0xa5   : > { %v217_v17 = vpop.f32.mrf.mxu2  ;;  %v223_v18 = vpop.f32.mrf.mxu3 }
  0xa6   : > { %231 = vst [vmem:[%s137_s6 + $0x28] sm:$0xff] %v217_v17 }
  0xa7   : > { %233 = vst [vmem:[%s137_s6 + $0x38] sm:$0xff] %v223_v18 }
  0xa8   : > { %411 = shalt.err (!%p408_p3)
}
  0xa9   : > { %s448_s29 = smov 128   ;;  %s449_s30 = smov 8  }
  0xaa   : > { %343 = dma.vmem_to_hbm [thread:$0]  (%p503_p5), %s248_s17, 1024, %s250_s21, %s235_s13, %s448_s29, %s448_s29, %s449_s30  }
  0xab PF: > { %p349_p4 = scmp.ge.s32.totalorder %s446_s12, 2  ;;  %s264_s3 = sand.u32 1, %s434_s9  }
  0xac   : > { %s265_s4 = scalar_lea.sflag [#allocation3], %s264_s3 }
  0xad   : > { %p346_p7 = pnand %p349_p4, %p507_p6 }
  0xaf   : > { %p347_p8 = pneg %p346_p7 }
  0xb1   : > { %429 = dma.done.wait (%p347_p8), %s265_s4, 1024  }
  0xb2   : > { %431 = vsyncadd (%p347_p8), %s265_s4, 4294966272  ;;  %p12_p9 = scmp.ge.s32.totalorder %s490_s15, 6   ;;  %s571_s9 = smov %s438_s10 }
  0xb3   : > { %s572_s10 = smov %s442_s11  ;;  %s573_s11 = smov %s501_s18 }
  0xb4   : > { %s574_s12 = smov %s490_s15  ;;  %14 = sbr.rel (!%p12_p9) target bundleno = 3 (0x3), region = 63 }
  0xb9   :  { %271 = vsyncpa [#allocation3], 1 }
  0xba   :  { %273 = vsyncpa [#allocation3 + $0x1], 1 }

</bundles_post_ra>
